<compile_context>
chip_gen: v7x
topology: tpu7x:2x2x1
jax: 0.10.0
libtpu: 0.0.40
codegen_flags: <defaults>
</compile_context>

<pallas_src>
import functools
import math

import jax
import jax.numpy as jnp
from jax import lax
from jax.experimental import pallas as pl
from jax.experimental.pallas import tpu as pltpu


# ----------------------------- Pallas kernel --------------------------------


def fused_self_attention_kernel(xq_ref, xk_ref, xv_ref, w_ref, b_ref, o_ref,
                                *, multiheads, head_dim, q_len, k_len, scale,
                                mask_right):
    """One batch' tile: QKV projection + MHA + head merge, fully fused.

    Kernel-visible block shapes (leading batch' dim squeezed):
      xq_ref: (M*Lq, D_out)    xk_ref / xv_ref: (M*Lk, D_out)
      w_ref : (3, D_out, Dh)   b_ref: (3, 1, Dh)
      o_ref : (Lq, M*Dh)
    Rows of xq/xk/xv are head-major: row h*L + l is (head h, position l).
    """
    M, Dh, Lq, Lk = multiheads, head_dim, q_len, k_len

    wq, wk, wv = w_ref[0], w_ref[1], w_ref[2]          # (D_out, Dh)
    bq, bk, bv = b_ref[0], b_ref[1], b_ref[2]          # (1, Dh)

    # All-heads projections: one MXU matmul per Q/K/V (heads share weights).
    q = jnp.dot(xq_ref[...], wq, preferred_element_type=jnp.float32) + bq
    k = jnp.dot(xk_ref[...], wk, preferred_element_type=jnp.float32) + bk
    v = jnp.dot(xv_ref[...], wv, preferred_element_type=jnp.float32) + bv

    # Scale Q instead of the (M, Lq, Lk) score tensor (fewer elementwise ops).
    q = q * jnp.float32(scale)

    # Head-major rows -> batched (M, L, Dh) views (cheap retile: L is the
    # sublane axis of the 2-D matmul result).
    q = q.reshape(M, Lq, Dh)
    k = k.reshape(M, Lk, Dh)
    v = v.reshape(M, Lk, Dh)

    # Batched scores over heads; contract last dims (no explicit K transpose).
    s = jnp.einsum('mqd,mkd->mqk', q, k, preferred_element_type=jnp.float32)

    if mask_right:
        # Hoisted: identical for every head; broadcast over the head axis.
        row = lax.broadcasted_iota(jnp.int32, (Lq, Lk), 0)
        col = lax.broadcasted_iota(jnp.int32, (Lq, Lk), 1)
        bias = jnp.where(col > row, jnp.float32(1.0e12), jnp.float32(0.0))
        s = s - bias[None, :, :]

    # Softmax over keys (approx reciprocal -> EUP slot, off the VALU).
    mx = jnp.max(s, axis=-1, keepdims=True)
    e = jnp.exp(s - mx)
    a = e * pl.reciprocal(jnp.sum(e, axis=-1, keepdims=True), approx=True)

    o = jnp.einsum('mqk,mkd->mqd', a, v, preferred_element_type=jnp.float32)

    # Merge heads along lanes and store one lane-dense (Lq, M*Dh) slab.
    o_ref[...] = jnp.concatenate([o[h] for h in range(M)],
                                 axis=-1).astype(o_ref.dtype)


# ------------------------------ JAX wrapper ----------------------------------


def self_attention_forward(Q_seq, K_seq, V_seq, params, multiheads, head_dim,
                           mask_right=False):
    WQ, bQ, WK, bK, WV, bV = params
    M, Dh = multiheads, head_dim
    D_out = M * Dh

    B, Lq, _ = Q_seq.shape
    Lk = K_seq.shape[1]
    assert B % M == 0, "module quirk: leading dim shrinks by `multiheads`"
    Bp = B // M

    # The torch `.view(-1, L, M, Dh)` on the *projected* tensor is a flat
    # reinterpretation; since the Linear is row-wise it commutes with the
    # projection, so the same reinterpretation is applied to the inputs.  One
    # host-side transpose puts heads major so every per-head row block the
    # kernel touches is contiguous.
    def head_major(x, L):
        return (x.reshape(Bp, L, M, D_out)
                 .transpose(0, 2, 1, 3)
                 .reshape(Bp, M * L, D_out))

    Xq = head_major(Q_seq, Lq)
    Xk = head_major(K_seq, Lk)
    Xv = head_major(V_seq, Lk)

    # Pre-transpose / stack the projection weights once (outside the kernel).
    Wt = jnp.stack([WQ.T, WK.T, WV.T])             # (3, D_out, Dh)
    bias = jnp.stack([bQ, bK, bV])[:, None, :]     # (3, 1, Dh)

    kern = functools.partial(
        fused_self_attention_kernel,
        multiheads=M, head_dim=Dh, q_len=Lq, k_len=Lk,
        scale=1.0 / math.sqrt(Dh), mask_right=mask_right,
    )

    out = pl.pallas_call(
        kern,
        out_shape=jax.ShapeDtypeStruct((Bp, Lq, D_out), jnp.float32),
        grid=(Bp,),
        in_specs=[
            pl.BlockSpec((None, M * Lq, D_out), lambda b: (b, 0, 0)),
            pl.BlockSpec((None, M * Lk, D_out), lambda b: (b, 0, 0)),
            pl.BlockSpec((None, M * Lk, D_out), lambda b: (b, 0, 0)),
            pl.BlockSpec((3, D_out, Dh), lambda b: (0, 0, 0)),   # resident weights
            pl.BlockSpec((3, 1, Dh), lambda b: (0, 0, 0)),       # resident biases
        ],
        out_specs=pl.BlockSpec((None, Lq, D_out), lambda b: (b, 0, 0)),
        compiler_params=pltpu.CompilerParams(
            dimension_semantics=("parallel",)),
    )(Xq, Xk, Xv, Wt, bias)
    return out


# --------------------------- Pure-JAX reference ------------------------------


def reference_forward(Q_seq, K_seq, V_seq, params, multiheads, head_dim,
                      mask_right=False):
    WQ, bQ, WK, bK, WV, bV = params

    def lin(x, w, b):
        return x @ w.T + b

    def split_heads(x, L):
        return jnp.transpose(x.reshape(-1, L, multiheads, head_dim), (0, 2, 1, 3))

    Lq, Lk = Q_seq.shape[1], K_seq.shape[1]
    Q = split_heads(lin(Q_seq, WQ, bQ), Lq)
    K = split_heads(lin(K_seq, WK, bK), Lk)
    V = split_heads(lin(V_seq, WV, bV), Lk)

    A = jnp.matmul(Q, jnp.swapaxes(K, 2, 3)) / math.sqrt(head_dim)
    if mask_right:
        A = A - jnp.triu(jnp.ones((A.shape[-2], A.shape[-1])), k=1) * 1.0e12
    A = jax.nn.softmax(A, axis=-1)
    O = jnp.matmul(A, V)
    O = jnp.transpose(O, (0, 2, 1, 3)).reshape(-1, Lq, multiheads * head_dim)
    return O


# ---------------------------------- main -------------------------------------


if __name__ == "__main__":
    multiheads = 4
    head_dim = 32
    output_dim = multiheads * head_dim   # 128 -> lane-dense input & output
    batch = 8                            # must be divisible by multiheads (module quirk)
    seq_len = 16

    key = jax.random.PRNGKey(0)
    kwq, kbq, kwk, kbk, kwv, kbv, kx = jax.random.split(key, 7)
    bound = 1.0 / math.sqrt(output_dim)

    def u(k, shape):
        return jax.random.uniform(k, shape, jnp.float32, minval=-bound, maxval=bound)

    params = (
        u(kwq, (head_dim, output_dim)), u(kbq, (head_dim,)),
        u(kwk, (head_dim, output_dim)), u(kbk, (head_dim,)),
        u(kwv, (head_dim, output_dim)), u(kbv, (head_dim,)),
    )

    x = jax.random.normal(kx, (batch, seq_len, output_dim), jnp.float32)

    # Self-attention: Q_seq = K_seq = V_seq = x; check both mask modes.
    for mask_right in (False, True):
        out = self_attention_forward(x, x, x, params, multiheads, head_dim,
                                     mask_right)
        out = jax.block_until_ready(out)
        ref = reference_forward(x, x, x, params, multiheads, head_dim, mask_right)
        assert out.shape == (batch // multiheads, seq_len, output_dim), out.shape
        # Tolerance loosened slightly (2e-3) to accommodate the EUP approx
        # reciprocal used in the softmax normalization.
        assert jnp.allclose(out, ref, rtol=2e-3, atol=2e-3), (
            f"mismatch vs reference (mask_right={mask_right}), "
            f"max abs err={float(jnp.max(jnp.abs(out - ref)))}")

    print("KERNEL_OK")
</pallas_src>

<mosaic_0001>
module attributes {stable_mosaic.version = 11 : i64} {
  func.func @fused_self_attention_kernel(%arg0: i32, %arg1: memref<1x64x128xf32, #tpu.memory_space<vmem>>, %arg2: memref<1x64x128xf32, #tpu.memory_space<vmem>>, %arg3: memref<1x64x128xf32, #tpu.memory_space<vmem>>, %arg4: memref<3x128x32xf32, #tpu.memory_space<vmem>>, %arg5: memref<3x1x32xf32, #tpu.memory_space<vmem>>, %arg6: memref<1x16x128xf32, #tpu.memory_space<vmem>>) attributes {dimension_semantics = [#tpu.dimension_semantics<parallel>], iteration_bounds = array<i64: 2>, scalar_prefetch = 0 : i64, scratch_operands = 0 : i64, tpu.core_type = #tpu.core_type<tc>, window_params = [{transform_indices = @transform_0, window_bounds = array<i64: 1, 64, 128>}, {transform_indices = @transform_1, window_bounds = array<i64: 1, 64, 128>}, {transform_indices = @transform_2, window_bounds = array<i64: 1, 64, 128>}, {pipeline_mode = #tpu.pipeline_mode<synchronous>, transform_indices = @transform_3, window_bounds = array<i64: 3, 128, 32>}, {pipeline_mode = #tpu.pipeline_mode<synchronous>, transform_indices = @transform_4, window_bounds = array<i64: 3, 1, 32>}, {transform_indices = @transform_5, window_bounds = array<i64: 1, 16, 128>}]} {
    %c0 = arith.constant 0 : index
    %c0_0 = arith.constant 0 : index
    %c0_1 = arith.constant 0 : index
    %0 = vector.load %arg4[%c0, %c0_0, %c0_1] : memref<3x128x32xf32, #tpu.memory_space<vmem>>, vector<1x128x32xf32>
    %1 = vector.shape_cast %0 : vector<1x128x32xf32> to vector<128x32xf32>
    %c1 = arith.constant 1 : index
    %c0_2 = arith.constant 0 : index
    %c0_3 = arith.constant 0 : index
    %2 = vector.load %arg4[%c1, %c0_2, %c0_3] : memref<3x128x32xf32, #tpu.memory_space<vmem>>, vector<1x128x32xf32>
    %3 = vector.shape_cast %2 : vector<1x128x32xf32> to vector<128x32xf32>
    %c2 = arith.constant 2 : index
    %c0_4 = arith.constant 0 : index
    %c0_5 = arith.constant 0 : index
    %4 = vector.load %arg4[%c2, %c0_4, %c0_5] : memref<3x128x32xf32, #tpu.memory_space<vmem>>, vector<1x128x32xf32>
    %5 = vector.shape_cast %4 : vector<1x128x32xf32> to vector<128x32xf32>
    %c0_6 = arith.constant 0 : index
    %c0_7 = arith.constant 0 : index
    %c0_8 = arith.constant 0 : index
    %6 = vector.load %arg5[%c0_6, %c0_7, %c0_8] : memref<3x1x32xf32, #tpu.memory_space<vmem>>, vector<1x1x32xf32>
    %7 = vector.shape_cast %6 : vector<1x1x32xf32> to vector<1x32xf32>
    %c1_9 = arith.constant 1 : index
    %c0_10 = arith.constant 0 : index
    %c0_11 = arith.constant 0 : index
    %8 = vector.load %arg5[%c1_9, %c0_10, %c0_11] : memref<3x1x32xf32, #tpu.memory_space<vmem>>, vector<1x1x32xf32>
    %9 = vector.shape_cast %8 : vector<1x1x32xf32> to vector<1x32xf32>
    %c2_12 = arith.constant 2 : index
    %c0_13 = arith.constant 0 : index
    %c0_14 = arith.constant 0 : index
    %10 = vector.load %arg5[%c2_12, %c0_13, %c0_14] : memref<3x1x32xf32, #tpu.memory_space<vmem>>, vector<1x1x32xf32>
    %11 = vector.shape_cast %10 : vector<1x1x32xf32> to vector<1x32xf32>
    %c0_15 = arith.constant 0 : index
    %c0_16 = arith.constant 0 : index
    %c0_17 = arith.constant 0 : index
    %12 = vector.load %arg1[%c0_15, %c0_16, %c0_17] : memref<1x64x128xf32, #tpu.memory_space<vmem>>, vector<1x64x128xf32>
    %13 = vector.shape_cast %12 : vector<1x64x128xf32> to vector<64x128xf32>
    %cst = arith.constant dense<0.000000e+00> : vector<64x32xf32>
    %14 = tpu.matmul %13, %1, %cst {dimension_numbers = #tpu.dot_dimension_numbers<[1], [0], [0], [1], [0, 0, 1, 1], [], []>} : vector<64x128xf32>, vector<128x32xf32>, vector<64x32xf32> -> vector<64x32xf32>
    %15 = vector.broadcast %7 : vector<1x32xf32> to vector<64x32xf32>
    %16 = arith.addf %14, %15 : vector<64x32xf32>
    %c0_18 = arith.constant 0 : index
    %c0_19 = arith.constant 0 : index
    %c0_20 = arith.constant 0 : index
    %17 = vector.load %arg2[%c0_18, %c0_19, %c0_20] : memref<1x64x128xf32, #tpu.memory_space<vmem>>, vector<1x64x128xf32>
    %18 = vector.shape_cast %17 : vector<1x64x128xf32> to vector<64x128xf32>
    %cst_21 = arith.constant dense<0.000000e+00> : vector<64x32xf32>
    %19 = tpu.matmul %18, %3, %cst_21 {dimension_numbers = #tpu.dot_dimension_numbers<[1], [0], [0], [1], [0, 0, 1, 1], [], []>} : vector<64x128xf32>, vector<128x32xf32>, vector<64x32xf32> -> vector<64x32xf32>
    %20 = vector.broadcast %9 : vector<1x32xf32> to vector<64x32xf32>
    %21 = arith.addf %19, %20 : vector<64x32xf32>
    %c0_22 = arith.constant 0 : index
    %c0_23 = arith.constant 0 : index
    %c0_24 = arith.constant 0 : index
    %22 = vector.load %arg3[%c0_22, %c0_23, %c0_24] : memref<1x64x128xf32, #tpu.memory_space<vmem>>, vector<1x64x128xf32>
    %23 = vector.shape_cast %22 : vector<1x64x128xf32> to vector<64x128xf32>
    %cst_25 = arith.constant dense<0.000000e+00> : vector<64x32xf32>
    %24 = tpu.matmul %23, %5, %cst_25 {dimension_numbers = #tpu.dot_dimension_numbers<[1], [0], [0], [1], [0, 0, 1, 1], [], []>} : vector<64x128xf32>, vector<128x32xf32>, vector<64x32xf32> -> vector<64x32xf32>
    %25 = vector.broadcast %11 : vector<1x32xf32> to vector<64x32xf32>
    %26 = arith.addf %24, %25 : vector<64x32xf32>
    %cst_26 = arith.constant 0.176776692 : f32
    %27 = vector.broadcast %cst_26 : f32 to vector<64x32xf32>
    %28 = arith.mulf %16, %27 : vector<64x32xf32>
    %29 = vector.shape_cast %28 : vector<64x32xf32> to vector<4x16x32xf32>
    %30 = vector.shape_cast %21 : vector<64x32xf32> to vector<4x16x32xf32>
    %31 = vector.shape_cast %26 : vector<64x32xf32> to vector<4x16x32xf32>
    "tpu.trace_start"() <{level = 10 : i32, message = "mqd,mkd->mqk"}> : () -> ()
    %cst_27 = arith.constant dense<0.000000e+00> : vector<4x16x16xf32>
    %32 = tpu.matmul %29, %30, %cst_27 {dimension_numbers = #tpu.dot_dimension_numbers<[2], [2], [1], [1], [0, 0, 0, 1, 1, 1], [0], [0]>} : vector<4x16x32xf32>, vector<4x16x32xf32>, vector<4x16x16xf32> -> vector<4x16x16xf32>
    "tpu.trace_stop"() : () -> ()
    %cst_28 = arith.constant dense<0xFF800000> : vector<4x16xf32>
    %33 = vector.multi_reduction <maximumf>, %32, %cst_28 [2] : vector<4x16x16xf32> to vector<4x16xf32>
    %34 = vector.shape_cast %33 : vector<4x16xf32> to vector<4x16x1xf32>
    %35 = vector.broadcast %34 : vector<4x16x1xf32> to vector<4x16x16xf32>
    %36 = arith.subf %32, %35 : vector<4x16x16xf32>
    %37 = math.exp %36 : vector<4x16x16xf32>
    %cst_29 = arith.constant dense<0.000000e+00> : vector<4x16xf32>
    %38 = vector.multi_reduction <add>, %37, %cst_29 [2] : vector<4x16x16xf32> to vector<4x16xf32>
    %39 = vector.shape_cast %38 : vector<4x16xf32> to vector<4x16x1xf32>
    %40 = tpu.reciprocal %39 {approx = true} : vector<4x16x1xf32> -> vector<4x16x1xf32>
    %41 = vector.broadcast %40 : vector<4x16x1xf32> to vector<4x16x16xf32>
    %42 = arith.mulf %37, %41 : vector<4x16x16xf32>
    "tpu.trace_start"() <{level = 10 : i32, message = "mqk,mkd->mqd"}> : () -> ()
    %cst_30 = arith.constant dense<0.000000e+00> : vector<4x16x32xf32>
    %43 = tpu.matmul %42, %31, %cst_30 {dimension_numbers = #tpu.dot_dimension_numbers<[2], [1], [1], [2], [0, 0, 0, 1, 1, 2], [0], [0]>} : vector<4x16x16xf32>, vector<4x16x32xf32>, vector<4x16x32xf32> -> vector<4x16x32xf32>
    "tpu.trace_stop"() : () -> ()
    %44 = vector.extract_strided_slice %43 {offsets = [0, 0, 0], sizes = [1, 16, 32], strides = [1, 1, 1]} : vector<4x16x32xf32> to vector<1x16x32xf32>
    %45 = vector.shape_cast %44 : vector<1x16x32xf32> to vector<16x32xf32>
    %46 = vector.extract_strided_slice %43 {offsets = [1, 0, 0], sizes = [1, 16, 32], strides = [1, 1, 1]} : vector<4x16x32xf32> to vector<1x16x32xf32>
    %47 = vector.shape_cast %46 : vector<1x16x32xf32> to vector<16x32xf32>
    %48 = vector.extract_strided_slice %43 {offsets = [2, 0, 0], sizes = [1, 16, 32], strides = [1, 1, 1]} : vector<4x16x32xf32> to vector<1x16x32xf32>
    %49 = vector.shape_cast %48 : vector<1x16x32xf32> to vector<16x32xf32>
    %50 = vector.extract_strided_slice %43 {offsets = [3, 0, 0], sizes = [1, 16, 32], strides = [1, 1, 1]} : vector<4x16x32xf32> to vector<1x16x32xf32>
    %51 = vector.shape_cast %50 : vector<1x16x32xf32> to vector<16x32xf32>
    %52 = tpu.concatenate %45, %47, %49, %51 in 1 : vector<16x32xf32>, vector<16x32xf32>, vector<16x32xf32>, vector<16x32xf32> -> vector<16x128xf32>
    %c0_31 = arith.constant 0 : index
    %c0_32 = arith.constant 0 : index
    %c0_33 = arith.constant 0 : index
    %53 = vector.load %arg6[%c0_31, %c0_32, %c0_33] : memref<1x16x128xf32, #tpu.memory_space<vmem>>, vector<1x16x128xf32>
    %54 = vector.shape_cast %53 : vector<1x16x128xf32> to vector<16x128xf32>
    %55 = vector.shape_cast %52 : vector<16x128xf32> to vector<1x16x128xf32>
    tpu.vector_store %arg6[%c0_31, %c0_32, %c0_33], %55 {strides = array<i32>} : memref<1x16x128xf32, #tpu.memory_space<vmem>>, vector<1x16x128xf32>,
    return
  }
  func.func @transform_0(%arg0: i32) -> (i32, i32, i32) {
    %c0_i32 = arith.constant 0 : i32
    %c0_i32_0 = arith.constant 0 : i32
    %c0_i32_1 = arith.constant 0 : i32
    return %arg0, %c0_i32, %c0_i32_0 : i32, i32, i32
  }
  func.func @transform_1(%arg0: i32) -> (i32, i32, i32) {
    %c0_i32 = arith.constant 0 : i32
    %c0_i32_0 = arith.constant 0 : i32
    %c0_i32_1 = arith.constant 0 : i32
    return %arg0, %c0_i32, %c0_i32_0 : i32, i32, i32
  }
  func.func @transform_2(%arg0: i32) -> (i32, i32, i32) {
    %c0_i32 = arith.constant 0 : i32
    %c0_i32_0 = arith.constant 0 : i32
    %c0_i32_1 = arith.constant 0 : i32
    return %arg0, %c0_i32, %c0_i32_0 : i32, i32, i32
  }
  func.func @transform_3(%arg0: i32) -> (i32, i32, i32) {
    %c0_i32 = arith.constant 0 : i32
    %c0_i32_0 = arith.constant 0 : i32
    %c0_i32_1 = arith.constant 0 : i32
    %c0_i32_2 = arith.constant 0 : i32
    return %c0_i32, %c0_i32_0, %c0_i32_1 : i32, i32, i32
  }
  func.func @transform_4(%arg0: i32) -> (i32, i32, i32) {
    %c0_i32 = arith.constant 0 : i32
    %c0_i32_0 = arith.constant 0 : i32
    %c0_i32_1 = arith.constant 0 : i32
    %c0_i32_2 = arith.constant 0 : i32
    return %c0_i32, %c0_i32_0, %c0_i32_1 : i32, i32, i32
  }
  func.func @transform_5(%arg0: i32) -> (i32, i32, i32) {
    %c0_i32 = arith.constant 0 : i32
    %c0_i32_0 = arith.constant 0 : i32
    %c0_i32_1 = arith.constant 0 : i32
    return %arg0, %c0_i32, %c0_i32_0 : i32, i32, i32
  }
}

</mosaic_0001>

<bundles_post_ra>
// kernel: tpu_custom_call.1
= control target key start
LH: loop header
LB: loop body
LE: loop exit
PB: predicated region body
PF: predicated region fallthrough
CT: control target
= control target key end

     0   :  { %10 = vsyncpa [#allocation3], 0  ;;  %s2649_s0 = inlined_call_operand.vmem [shape: f32[2,64,128], index: 0, kind: input, shape index: {}]   ;;  %s2650_s1 = inlined_call_operand.vmem [shape: f32[2,64,128], index: 1, kind: input, shape index: {}]   ;;  %s2651_s2 = inlined_call_operand.vmem [shape: f32[2,64,128], index: 2, kind: input, shape index: {}]   ;;  %s2652_s3 = inlined_call_operand.vmem [shape: f32[3,128,32], index: 3, kind: input, shape index: {}]   ;;  %s2653_s4 = inlined_call_operand.vmem [shape: f32[3,1,32], index: 4, kind: input, shape index: {}]   ;;  %s2654_s5 = inlined_call_operand.hbm [shape: f32[2,16,128], index: 5, kind: output, shape index: {}]  }
   0x1   :  { %12 = vsyncpa [#allocation3 + $0x1], 0  ;;  %s2264_s18 = smov 0   ;;  %s2266_s19 = smov 0  }
   0x2   :  { %s2268_s20 = smov 0   ;;  %s2270_s21 = smov 0  }
   0x3 LB: > { %s2285_s22 = sadd.s32 4294967295, %s2226_s21   ;;  %s1579_s23 = sadd.s32 4294967294, %s2226_s21   ;;  %s2226_s21 = sphi %s2270_s21, %s2662_s21   ;;  %s2222_s20 = sphi %s2268_s20, %s2661_s20   ;;  %s2218_s19 = sphi %s2266_s19, %s2660_s19   ;;  %s2214_s18 = sphi %s2264_s18, %s2659_s18  }
   0x4   : > { %s2289_s24 = sadd.s32 1, %s2226_s21   ;;  %s145_s25 = sadd.s32 1, %s2222_s20 }
   0x5   : > { %s142_s26 = ssub.s32 %s2226_s21, %s2289_s24  ;;  %p155_p0 = scmp.ne.s32.totalorder %s2222_s20, %s2218_s19 }
   0x6   : > { %p143_p1 = scmp.eq.s32.totalorder %s142_s26, 0  ;;  %p156_p2 = scmp.eq.s32.totalorder %s2285_s22, 1 }
   0x7   : > { %p161_p3 = scmp.ne.s32.totalorder %s2218_s19, %s2214_s18  ;;  %p162_p4 = scmp.eq.s32.totalorder %s1579_s23, 1 }
   0x8   : > { %s2300_s27 = scalar_select %p143_p1, %s2222_s20, %s145_s25  }
   0x9   : > { %p2302_p5 = por %p156_p2, %p155_p0  ;;  %p2306_p6 = por %p162_p4, %p161_p3 }
   0xa   : > { %p1582_p7 = scmp.ge.s32.totalorder %s2226_s21, 1  ;;  %p210_p8 = scmp.lt.s32.totalorder %s2226_s21, 3 }
   0xc   : > { %p211_p9 = pnand %p1582_p7, %p210_p8 }
   0xd   : > { %v1590_v0 = vld [vmem:[%s2652_s3 + $0x80] sm:$0xff] (!%p211_p9)  ;;  %v1591_v1 = vld [vmem:[%s2652_s3 + $0x88] sm:$0xff] (!%p211_p9)  ;;  %v1592_v2 = vld [vmem:[%s2652_s3 + $0x90] sm:$0xff] (!%p211_p9)  ;;  %p248_p10 = scmp.lt.s32.totalorder (!%p211_p9), %s2285_s22, 1  ;;  %vm683_vm0 = vcmask (!%p211_p9), 261120   ;;  %vm1032_vm2 = vcmask (!%p211_p9), 130048  }
   0xe   : > { %214 = sbr.rel (%p211_p9) target bundleno = 1169 (0x491), region = 40  ;;  %v1984_v3 = vpack.c.bf16 (!%p211_p9), %v1591_v1, %v1590_v0  ;;  %v1593_v4 = vld [vmem:[%s2652_s3 + $0x98] sm:$0xff] (!%p211_p9)  ;;  %v263_v5 = vld [vmem:[%s2652_s3] sm:$0xff] (!%p211_p9)  ;;  %v264_v6 = vld [vmem:[%s2652_s3 + $0x8] sm:$0xff] (!%p211_p9)  ;;  %s2228_s13 = smov (!%p211_p9), 32   ;;  %vm1471_vm3 = vcmask (!%p211_p9), 523264  }
   0xf   : > { %v1988_v7 = vpack.c.bf16 (!%p211_p9), %v1593_v4, %v1592_v2  ;;  %v1952_v8 = vpack.c.bf16 (!%p211_p9), %v264_v6, %v263_v5  ;;  %v1594_v9 = vld [vmem:[%s2652_s3 + $0xa0] sm:$0xff] (!%p211_p9)  ;;  %v1595_v10 = vld [vmem:[%s2652_s3 + $0xa8] sm:$0xff] (!%p211_p9)  ;;  %v265_v11 = vld [vmem:[%s2652_s3 + $0x10] sm:$0xff] (!%p211_p9)  ;;  %s2229_s15 = smov (!%p211_p9), 64   ;;  %s2230_s16 = smov (!%p211_p9), 96   ;;  %vm1474_vm4 = vcmask (!%p211_p9), 785408  }
  0x10   : > { %1985 = vmatprep.subr.bf16.mxu1 (!%p211_p9), %v1984_v3  ;;  %v266_v12 = vld [vmem:[%s2652_s3 + $0x18] sm:$0xff] (!%p211_p9)  ;;  %v267_v14 = vld [vmem:[%s2652_s3 + $0x20] sm:$0xff] (!%p211_p9)  ;;  %v268_v15 = vld [vmem:[%s2652_s3 + $0x28] sm:$0xff] (!%p211_p9)  ;;  %v1992_v16 = vpack.c.bf16 (!%p211_p9), %v1595_v10, %v1594_v9  ;;  %s245_s17 = sand.u32 (!%p211_p9), 1, %s2218_s19   ;;  %s1659_s30 = sshll.u32 (!%p211_p9), %s2285_s22, 8 }
  0x11   : > { %1987 = vmatpush3.bf16.msra.mxu1 (!%p211_p9), %v1984_v3  ;;  %1953 = vmatprep.subr.bf16.mxu0 (!%p211_p9), %v1952_v8  ;;  %v1956_v13 = vpack.c.bf16 (!%p211_p9), %v266_v12, %v265_v11  ;;  %v1596_v17 = vld [vmem:[%s2652_s3 + $0xb0] sm:$0xff] (!%p211_p9)  ;;  %v1597_v18 = vld [vmem:[%s2652_s3 + $0xb8] sm:$0xff] (!%p211_p9)  ;;  %v1960_v19 = vpack.c.bf16 (!%p211_p9), %v268_v15, %v267_v14  ;;  %v1598_v23 = vld [vmem:[%s2652_s3 + $0xc0] sm:$0xff] (!%p211_p9)  ;;  %s1583_s23 = sshll.u32 (!%p211_p9), %s245_s17, 4  ;;  %s2231_s10 = smov (!%p211_p9), [#allocation2]  }
  0x12   : > { %1989 = vmatprep.subr.bf16.mxu1 (!%p211_p9), %v1988_v7  ;;  %1955 = vmatpush3.bf16.msra.mxu0 (!%p211_p9), %v1952_v8  ;;  %v269_v20 = vld [vmem:[%s2652_s3 + $0x30] sm:$0xff] (!%p211_p9)  ;;  %v270_v21 = vld [vmem:[%s2652_s3 + $0x38] sm:$0xff] (!%p211_p9)  ;;  %v1996_v22 = vpack.c.bf16 (!%p211_p9), %v1597_v18, %v1596_v17  ;;  %v1599_v24 = vld [vmem:[%s2652_s3 + $0xc8] sm:$0xff] (!%p211_p9)  ;;  %s247_s25 = scalar_lea.vmem (!%p211_p9), [#allocation2], %s1583_s23 }
  0x13   : > { %1957 = vmatprep.subr.bf16.mxu0 (!%p211_p9), %v1956_v13  ;;  %v1964_v25 = vpack.c.bf16 (!%p211_p9), %v270_v21, %v269_v20  ;;  %v271_v27 = vld [vmem:[%s2652_s3 + $0x40] sm:$0xff] (!%p211_p9)  ;;  %v272_v28 = vld [vmem:[%s2652_s3 + $0x48] sm:$0xff] (!%p211_p9)  ;;  %v2000_v30 = vpack.c.bf16 (!%p211_p9), %v1599_v24, %v1598_v23  ;;  %v1600_v31 = vld [vmem:[%s2652_s3 + $0xd0] sm:$0xff] (!%p211_p9)  ;;  %s1493_s26 = sshll.u32 (!%p211_p9), %s247_s25, 4  ;;  %s2601_s26 = int_to_ptr.vmem [resolvable:$true] %s1493_s26 }
  0x14   : > { %v1601_v32 = vld [vmem:[%s2652_s3 + $0xd8] sm:$0xff] (!%p211_p9)  ;;  %v1968_v33 = vpack.c.bf16 (!%p211_p9), %v272_v28, %v271_v27  ;;  %v273_v34 = vld [vmem:[%s2652_s3 + $0x50] sm:$0xff] (!%p211_p9)  ;;  %v1602_v37 = vld [vmem:[%s2652_s3 + $0xe0] sm:$0xff] (!%p211_p9)  ;;  %s2164_s8 = scalar_lea.vmem (!%p211_p9), %s2601_s26, 256 }
  0x15   : > { %s249_s7 = scalar_select %p248_p10, %s2285_s22, 1  ;;  %1991 = vmatpush3.bf16.msra.mxu1 %v1988_v7  ;;  %v274_v35 = vld [vmem:[%s2652_s3 + $0x58] sm:$0xff]  ;;  %v2004_v36 = vpack.c.bf16 %v1601_v32, %v1600_v31  ;;  %v1603_v38 = vld [vmem:[%s2652_s3 + $0xe8] sm:$0xff]  ;;  %v275_v40 = vld [vmem:[%s2652_s3 + $0x60] sm:$0xff] }
  0x16   : > { %1993 = vmatprep.subr.bf16.mxu1 %v1992_v16  ;;  %1959 = vmatpush3.bf16.msra.mxu0 %v1956_v13  ;;  %v1972_v39 = vpack.c.bf16 %v274_v35, %v273_v34  ;;  %v276_v41 = vld [vmem:[%s2652_s3 + $0x68] sm:$0xff]  ;;  %v2008_v42 = vpack.c.bf16 %v1603_v38, %v1602_v37  ;;  %v1604_v43 = vld [vmem:[%s2652_s3 + $0xf0] sm:$0xff]  ;;  %v1605_v44 = vld [vmem:[%s2652_s3 + $0xf8] sm:$0xff]  ;;  %s2608_s22 = scalar_lea.sflag [#allocation3], %s245_s17  ;;  %p2165_p11 = scmp.ne.s32.totalorder %s2601_s26, %s2164_s8 }
  0x17   : > { %s2350_s14 = sshll.u32 %s249_s7, 6  ;;  %1961 = vmatprep.subr.bf16.mxu0 %v1960_v19  ;;  %v1976_v45 = vpack.c.bf16 %v276_v41, %v275_v40  ;;  %v277_v46 = vld [vmem:[%s2652_s3 + $0x70] sm:$0xff]  ;;  %v278_v47 = vld [vmem:[%s2652_s3 + $0x78] sm:$0xff]  ;;  %v2012_v48 = vpack.c.bf16 %v1605_v44, %v1604_v43  ;;  %v1625_v0 = vld [vmem:[%s2653_s4 + $0x1] ss:$0 sm:$0xff] }
  0x18   : > { %s2368_s9 = scalar_lea.vmem %s2650_s1, %s2350_s14  ;;  %s2374_s12 = scalar_lea.vmem %s2649_s0, %s2350_s14  ;;  %v1980_v49 = vpack.c.bf16 %v278_v47, %v277_v46  ;;  %v1624_v2 = vld [vmem:[%s2653_s4] ss:$0 sm:$0xff]  ;;  %vm2448_vm1 = vmpackc.low %vm683_vm0, %vm683_vm0 }
  0x19   : > { %v437_v26 = vld [vmem:[%s2368_s9] sm:$0xff]  ;;  %1995 = vmatpush3.bf16.msra.mxu1 %v1992_v16  ;;  %v438_v50 = vld [vmem:[%s2368_s9 + $0x8] sm:$0xff]  ;;  %v439_v52 = vld [vmem:[%s2368_s9 + $0x10] sm:$0xff]  ;;  %s2498_s7 = scalar_lea.vmem %s2651_s2, %s2350_s14  ;;  %p2166_p12 = pnand %p2165_p11, %p2302_p5 }
  0x1a   : > { %1840 = vmatprep.mubr.f32.mxu1 %v437_v26  ;;  %v318_v29 = vld [vmem:[%s2374_s12] sm:$0xff]  ;;  %1997 = vmatprep.subr.bf16.mxu1 %v1996_v22  ;;  %v319_v51 = vld [vmem:[%s2374_s12 + $0x8] sm:$0xff]  ;;  %v320_v53 = vld [vmem:[%s2374_s12 + $0x10] sm:$0xff]  ;;  %s2168_s14 = sshll.u32 %s2231_s10, 4  ;;  %s2169_s14 = int_to_ptr.vmem [resolvable:$false] %s2168_s14 }
  0x1b   : > { %1796 = vmatprep.mubr.f32.mxu0 %v318_v29  ;;  %1963 = vmatpush3.bf16.msra.mxu0 %v1960_v19  ;;  %v440_v54 = vld [vmem:[%s2368_s9 + $0x18] sm:$0xff]  ;;  %v441_v56 = vld [vmem:[%s2368_s9 + $0x20] sm:$0xff]  ;;  %v442_v58 = vld [vmem:[%s2368_s9 + $0x28] sm:$0xff]  ;;  %p2167_p13 = pneg %p2166_p12  ;;  %p2171_p0 = scmp.lt.s32.totalorder %s2601_s26, %s2169_s14 }
  0x1c   : > { %1965 = vmatprep.subr.bf16.mxu0 %v1964_v25  ;;  %v321_v55 = vld [vmem:[%s2374_s12 + $0x18] sm:$0xff]  ;;  %v322_v57 = vld [vmem:[%s2374_s12 + $0x20] sm:$0xff]  ;;  %v323_v59 = vld [vmem:[%s2374_s12 + $0x28] sm:$0xff] }
  0x1d   : > { %1999 = vmatpush3.bf16.msra.mxu1 %v1996_v22  ;;  %v443_v60 = vld [vmem:[%s2368_s9 + $0x30] sm:$0xff]  ;;  %v444_v62 = vld [vmem:[%s2368_s9 + $0x38] sm:$0xff]  ;;  %v1606_v47 = vld [vmem:[%s2652_s3 + $0x100] sm:$0xff] }
  0x1e   : > { %2001 = vmatprep.subr.bf16.mxu1 %v2000_v30  ;;  %v324_v61 = vld [vmem:[%s2374_s12 + $0x30] sm:$0xff]  ;;  %v325_v63 = vld [vmem:[%s2374_s12 + $0x38] sm:$0xff]  ;;  %v557_v8 = vld [vmem:[%s2498_s7 + $0x8] sm:$0xff]  ;;  %s2606_s12 = scalar_lea.hbm %s2654_s5, %s1659_s30 }
  0x1f   : > { %1967 = vmatpush3.bf16.msra.mxu0 %v1964_v25 }
  0x20   : > { %1969 = vmatprep.subr.bf16.mxu0 %v1968_v33 }
  0x21   : > { %2003 = vmatpush3.bf16.msra.mxu1 %v2000_v30 }
  0x22   : > { %2005 = vmatprep.subr.bf16.mxu1 %v2004_v36 }
  0x23   : > { %1971 = vmatpush3.bf16.msra.mxu0 %v1968_v33 }
  0x24   : > { %1973 = vmatprep.subr.bf16.mxu0 %v1972_v39 }
  0x25   : > { %2007 = vmatpush3.bf16.msra.mxu1 %v2004_v36 }
  0x26   : > { %2009 = vmatprep.subr.bf16.mxu1 %v2008_v42 }
  0x27   : > { %1975 = vmatpush3.bf16.msra.mxu0 %v1972_v39 }
  0x28   : > { %1977 = vmatprep.subr.bf16.mxu0 %v1976_v45 }
  0x29   : > { %2011 = vmatpush3.bf16.msra.mxu1 %v2008_v42 }
  0x2a   : > { %2013 = vmatprep.subr.bf16.mxu1 %v2012_v48 }
  0x2b   : > { %1979 = vmatpush3.bf16.msra.mxu0 %v1976_v45 }
  0x2c   : > { %1981 = vmatprep.subr.bf16.mxu0 %v1980_v49 }
  0x2d   : > { %2015 = vmatpush3.bf16.msra.mxu1 %v2012_v48  ;;  %v1607_v48 = vld [vmem:[%s2652_s3 + $0x108] sm:$0xff] }
  0x2f   : > { %1983 = vmatpush3.bf16.msra.mxu0 %v1980_v49  ;;  %v1608_v49 = vld [vmem:[%s2652_s3 + $0x110] sm:$0xff] }
  0x30   : > { %1841 = vmatmul.mubr.f32.vlgmr.msra.gmra.mrb[0].mxu1 %v438_v50  ;;  %v2016_v50 = vpack.c.bf16 %v1607_v48, %v1606_v47 }
  0x31   : > { %1843 = vmatprep.mubr.f32.mxu1 %v439_v52 }
  0x32   : > { %1797 = vmatmul.mubr.f32.vlgmr.msra.gmra.mrb[0].mxu0 %v319_v51  ;;  %v1609_v51 = vld [vmem:[%s2652_s3 + $0x118] sm:$0xff]  ;;  %2017 = vmatprep.subr.bf16.mxu0 %v2016_v50 }
  0x33   : > { %1799 = vmatprep.mubr.f32.mxu0 %v320_v53  ;;  %v2020_v52 = vpack.c.bf16 %v1609_v51, %v1608_v49  ;;  %v1610_v53 = vld [vmem:[%s2652_s3 + $0x120] sm:$0xff]  ;;  %2019 = vmatpush3.bf16.msra.mxu0 %v2016_v50 }
  0x34   : > { %1844 = vmatmul.mubr.f32.gmra.mrb[2].mxu1 %v440_v54  ;;  %v1611_v54 = vld [vmem:[%s2652_s3 + $0x128] sm:$0xff] }
  0x35   : > { %1846 = vmatprep.mubr.f32.mxu1 %v441_v56  ;;  %2021 = vmatprep.subr.bf16.mxu0 %v2020_v52  ;;  %v556_v56 = vld [vmem:[%s2498_s7] sm:$0xff] }
  0x36   : > { %1800 = vmatmul.mubr.f32.gmra.mrb[2].mxu0 %v321_v55  ;;  %v2024_v55 = vpack.c.bf16 %v1611_v54, %v1610_v53 }
  0x37   : > { %1802 = vmatprep.mubr.f32.mxu0 %v322_v57  ;;  %v1612_v57 = vld [vmem:[%s2652_s3 + $0x130] sm:$0xff]  ;;  %2023 = vmatpush3.bf16.msra.mxu0 %v2020_v52 }
  0x38   : > { %1847 = vmatmul.mubr.f32.gmra.mrb[4].mxu1 %v442_v58  ;;  %v1613_v58 = vld [vmem:[%s2652_s3 + $0x138] sm:$0xff]  ;;  %2025 = vmatprep.subr.bf16.mxu0 %v2024_v55 }
  0x39   : > { %1849 = vmatprep.mubr.f32.mxu1 %v443_v60  ;;  %v1614_v60 = vld [vmem:[%s2652_s3 + $0x140] sm:$0xff] }
  0x3a   : > { %1803 = vmatmul.mubr.f32.gmra.mrb[4].mxu0 %v323_v59  ;;  %v2028_v59 = vpack.c.bf16 %v1613_v58, %v1612_v57 }
  0x3b   : > { %1805 = vmatprep.mubr.f32.mxu0 %v324_v61  ;;  %v1615_v61 = vld [vmem:[%s2652_s3 + $0x148] sm:$0xff]  ;;  %2027 = vmatpush3.bf16.msra.mxu0 %v2024_v55 }
  0x3c   : > { %1850 = vmatmul.mubr.f32.gmra.mrb[6].mxu1 %v444_v62  ;;  %2029 = vmatprep.subr.bf16.mxu0 %v2028_v59  ;;  %v2032_v62 = vpack.c.bf16 %v1615_v61, %v1614_v60 }
  0x3e   : > { %1806 = vmatmul.mubr.f32.gmra.mrb[6].mxu0 %v325_v63  ;;  %v1616_v63 = vld [vmem:[%s2652_s3 + $0x150] sm:$0xff] }
  0x3f   : > { %1884 = vmatprep.mubr.f32.mxu0 %v556_v56  ;;  %2031 = vmatpush3.bf16.msra.mxu0 %v2028_v59 }
  0x40   : > { %2033 = vmatprep.subr.bf16.mxu0 %v2032_v62 }
  0x43   : > { %2035 = vmatpush3.bf16.msra.mxu0 %v2032_v62 }
 0x103   : > { %v1842_v1 = vpop.f32.mrb[0].mxu1 }
 0x104   : > { %v523_v3 = vadd.f32 %v1842_v1, %v1625_v0  ;;  %v517_v4 = vpop.f32.mrb[1].mxu1 }
 0x105   : > { %v1798_v5 = vpop.f32.mrb[0].mxu0  ;;  %v518_v6 = vadd.f32 %v1625_v0, %v517_v4 }
 0x106   : > { %v398_v7 = vpop.f32.mrb[1].mxu0  ;;  %v404_v16 = vadd.f32 %v1798_v5, %v1624_v2  ;;  %v1620_v5 = vld [vmem:[%s2652_s3 + $0x170] sm:$0xff] }
 0x107   : > { %v399_v9 = vadd.f32 %v1624_v2, %v398_v7  ;;  %v2048_v10 = vpack.c.bf16 %v523_v3, %v518_v6  ;;  %v1845_v11 = vpop.f32.mrb[2].mxu1  ;;  %v1619_v3 = vld [vmem:[%s2652_s3 + $0x168] sm:$0xff]  ;;  %v1621_v6 = vld [vmem:[%s2652_s3 + $0x178] sm:$0xff] }
 0x108   : > { %v533_v13 = vadd.f32 %v1845_v11, %v1625_v0  ;;  %v527_v14 = vpop.f32.mrb[3].mxu1  ;;  %v676_v25 = vmul.f32 0.17677669, %v404_v16  ;;  %v2044_v7 = vpack.c.bf16 %v1621_v6, %v1620_v5  ;;  %v560_v11 = vld [vmem:[%s2498_s7 + $0x20] sm:$0xff] }
 0x109   : > { %v675_v12 = vmul.f32 0.17677669, %v399_v9  ;;  %v1801_v15 = vpop.f32.mrb[2].mxu0  ;;  %2050 = vmatprep.subr.msk.bf16.mxu1 %vm2448_vm1, %v2048_v10  ;;  %v528_v17 = vadd.f32 %v1625_v0, %v527_v14  ;;  %v558_v9 = vld [vmem:[%s2498_s7 + $0x10] sm:$0xff]  ;;  %v563_v14 = vld [vmem:[%s2498_s7 + $0x38] sm:$0xff] }
 0x10a   : > { %v408_v18 = vpop.f32.mrb[3].mxu0  ;;  %2053 = vmatpush3.bf16.xpose.msk.msra.mxu1 %vm2448_vm1, %v2048_v10  ;;  %v414_v34 = vadd.f32 %v1801_v15, %v1624_v2  ;;  %v559_v10 = vld [vmem:[%s2498_s7 + $0x18] sm:$0xff] }
 0x10b   : > { %1900 = vmatprep.mubr.msk.f32.mxu1 %vm683_vm0, %v675_v12  ;;  %v409_v19 = vadd.f32 %v1624_v2, %v408_v18  ;;  %v2054_v20 = vpack.c.bf16 %v533_v13, %v528_v17  ;;  %v1848_v21 = vpop.f32.mrb[4].mxu1  ;;  %v561_v12 = vld [vmem:[%s2498_s7 + $0x28] sm:$0xff]  ;;  %v562_v13 = vld [vmem:[%s2498_s7 + $0x30] sm:$0xff]  ;;  %s2170_s7 = scalar_lea.vmem %s2169_s14, 512 }
 0x10c   : > { %v543_v22 = vadd.f32 %v1848_v21, %v1625_v0  ;;  %v537_v23 = vpop.f32.mrb[5].mxu1  ;;  %v678_v39 = vmul.f32 0.17677669, %v414_v34  ;;  %p2172_p1 = scmp.lt.s32.totalorder %s2170_s7, %s2164_s8 }
 0x10d   : > { %v1804_v24 = vpop.f32.mrb[4].mxu0  ;;  %2056 = vmatprep.subr.msk.bf16.mxu1 %vm2448_vm1, %v2054_v20  ;;  %v538_v26 = vadd.f32 %v1625_v0, %v537_v23  ;;  %v677_v28 = vmul.f32 0.17677669, %v409_v19 }
 0x10e   : > { %v418_v27 = vpop.f32.mrb[5].mxu0  ;;  %v424_v41 = vadd.f32 %v1804_v24, %v1624_v2  ;;  %p2173_p2 = por %p2172_p1, %p2171_p0 }
 0x10f   : > { %v2060_v29 = vpack.c.bf16 %v543_v22, %v538_v26  ;;  %v1851_v30 = vpop.f32.mrb[6].mxu1  ;;  %v419_v37 = vadd.f32 %v1624_v2, %v418_v27 }
 0x110   : > { %v553_v31 = vadd.f32 %v1851_v30, %v1625_v0  ;;  %v547_v32 = vpop.f32.mrb[7].mxu1  ;;  %v680_v43 = vmul.f32 0.17677669, %v424_v41  ;;  %p2174_p3 = pnand %p2173_p2, %p2167_p13 }
 0x111   : > { %v1807_v33 = vpop.f32.mrb[6].mxu0  ;;  %1901 = vmatmul.mubr.msk.f32.vlgmr.msra.gmra.mrb[8].mxu1 %vm683_vm0, %v676_v25  ;;  %v548_v35 = vadd.f32 %v1625_v0, %v547_v32  ;;  %v679_v40 = vmul.f32 0.17677669, %v419_v37  ;;  %v1617_v0 = vld [vmem:[%s2652_s3 + $0x158] sm:$0xff] }
 0x112   : > { %v428_v36 = vpop.f32.mrb[7].mxu0  ;;  %2059 = vmatpush3.bf16.xpose.msk.msra.mxu1 %vm2448_vm1, %v2054_v20  ;;  %1907 = vmatprep.mubr.msk.f32.mxu1 %vm683_vm0, %v677_v28  ;;  %v434_v45 = vadd.f32 %v1807_v33, %v1624_v2  ;;  %v2036_v1 = vpack.c.bf16 %v1617_v0, %v1616_v63 }
 0x113   : > { %2062 = vmatprep.subr.msk.bf16.mxu1 %vm2448_vm1, %v2060_v29  ;;  %v2066_v38 = vpack.c.bf16 %v553_v31, %v548_v35  ;;  %v429_v42 = vadd.f32 %v1624_v2, %v428_v36  ;;  %v1618_v2 = vld [vmem:[%s2652_s3 + $0x160] sm:$0xff] }
 0x114   : > { %v682_v46 = vmul.f32 0.17677669, %v434_v45  ;;  %2037 = vmatprep.subr.bf16.mxu0 %v2036_v1  ;;  %v2040_v4 = vpack.c.bf16 %v1619_v3, %v1618_v2 }
 0x115   : > { %v681_v44 = vmul.f32 0.17677669, %v429_v42  ;;  %2039 = vmatpush3.bf16.msra.mxu0 %v2036_v1 }
 0x116   : > { %2041 = vmatprep.subr.bf16.mxu0 %v2040_v4 }
 0x119   : > { %1908 = vmatmul.mubr.msk.f32.vlgmr.msra.gmra.mrb[10].mxu1 %vm683_vm0, %v678_v39  ;;  %2043 = vmatpush3.bf16.msra.mxu0 %v2040_v4 }
 0x11a   : > { %2065 = vmatpush3.bf16.xpose.msk.msra.mxu1 %vm2448_vm1, %v2060_v29  ;;  %1914 = vmatprep.mubr.msk.f32.mxu1 %vm683_vm0, %v679_v40 }
 0x11b   : > { %2068 = vmatprep.subr.msk.bf16.mxu1 %vm2448_vm1, %v2066_v38  ;;  %2045 = vmatprep.subr.bf16.mxu0 %v2044_v7 }
 0x11d   : > { %2047 = vmatpush3.bf16.msra.mxu0 %v2044_v7  ;;  %v1626_v7 = vld [vmem:[%s2653_s4 + $0x2] ss:$0 sm:$0xff] }
 0x120   : > { %1885 = vmatmul.mubr.f32.vlgmr.msra.gmra.mrb[8].mxu0 %v557_v8 }
 0x121   : > { %1915 = vmatmul.mubr.msk.f32.vlgmr.msra.gmra.mrb[12].mxu1 %vm683_vm0, %v680_v43  ;;  %1887 = vmatprep.mubr.f32.mxu0 %v558_v9 }
 0x122   : > { %2071 = vmatpush3.bf16.xpose.msk.msra.mxu1 %vm2448_vm1, %v2066_v38  ;;  %1921 = vmatprep.mubr.msk.f32.mxu1 %vm683_vm0, %v681_v44 }
 0x124   : > { %1888 = vmatmul.mubr.f32.gmra.mrb[10].mxu0 %v559_v10 }
 0x125   : > { %1890 = vmatprep.mubr.f32.mxu0 %v560_v11 }
 0x128   : > { %1891 = vmatmul.mubr.f32.gmra.mrb[12].mxu0 %v561_v12 }
 0x129   : > { %1922 = vmatmul.mubr.msk.f32.vlgmr.msra.gmra.mrb[14].mxu1 %vm683_vm0, %v682_v46  ;;  %1893 = vmatprep.mubr.f32.mxu0 %v562_v13 }
 0x12c   : > { %1894 = vmatmul.mubr.f32.gmra.mrb[14].mxu0 %v563_v14 }
 0x1e4   : > { %v1902_v15 = vpop.f32.mrb[8].mxu1 }
 0x1e5   : > { %v1036_v16 = vsel %vm1032_vm2, %v1902_v15, -inf  ;;  %v762_v17 = vpop.f32.mrb[9].mxu1 }
 0x1e6   : > { %1037 = vmax.xlane.f32.xlu0 %v1036_v16  ;;  %v1033_v18 = vsel %vm1032_vm2, %v762_v17, -inf }
 0x1ea   : > { %1034 = vmax.xlane.f32.xlu0 %v1033_v18 }
 0x1ec   : > { %v1909_v19 = vpop.f32.mrb[10].mxu1 }
 0x1ed   : > { %v1042_v20 = vsel %vm1032_vm2, %v1909_v19, -inf  ;;  %v849_v21 = vpop.f32.mrb[11].mxu1 }
 0x1ee   : > { %1043 = vmax.xlane.f32.xlu1 %v1042_v20  ;;  %v1039_v22 = vsel %vm1032_vm2, %v849_v21, -inf }
 0x1f2   : > { %1040 = vmax.xlane.f32.xlu1 %v1039_v22 }
 0x1f3   : > { %v1886_v4 = vpop.f32.mrb[8].mxu0 }
 0x1f4   : > { %v1916_v23 = vpop.f32.mrb[12].mxu1  ;;  %v636_v8 = vpop.f32.mrb[9].mxu0  ;;  %v642_v10 = vadd.f32 %v1886_v4, %v1626_v7 }
 0x1f5   : > { %v936_v24 = vpop.f32.mrb[13].mxu1  ;;  %v1048_v25 = vsel %vm1032_vm2, %v1916_v23, -inf  ;;  %v637_v11 = vadd.f32 %v1626_v7, %v636_v8 }
 0x1f6   : > { %1049 = vmax.xlane.f32.xlu1 %v1048_v25  ;;  %v1045_v26 = vsel %vm1032_vm2, %v936_v24, -inf }
 0x1f7   : > { %1046 = vmax.xlane.f32.xlu0 %v1045_v26  ;;  %v2072_v12 = vpack.c.bf16 %v642_v10, %v637_v11  ;;  %v1889_v13 = vpop.f32.mrb[10].mxu0 }
 0x1f8   : > { %v646_v14 = vpop.f32.mrb[11].mxu0 }
 0x1f9   : > { %2073 = vmatprep.subr.bf16.mxu1 %v2072_v12  ;;  %v647_v16 = vadd.f32 %v1626_v7, %v646_v14 }
 0x1fa   : > { %2075 = vmatpush3.bf16.msra.mxu1 %v2072_v12 }
 0x1fb   : > { %v1892_v18 = vpop.f32.mrb[12].mxu0 }
 0x1fc   : > { %v1923_v27 = vpop.f32.mrb[14].mxu1  ;;  %v662_v20 = vadd.f32 %v1892_v18, %v1626_v7 }
 0x1fd   : > { %v1023_v28 = vpop.f32.mrb[15].mxu1  ;;  %v1054_v29 = vsel %vm1032_vm2, %v1923_v27, -inf }
 0x1fe   : > { %1055 = vmax.xlane.f32.xlu1 %v1054_v29  ;;  %v1051_v30 = vsel %vm1032_vm2, %v1023_v28, -inf }
 0x1ff   : > { %1052 = vmax.xlane.f32.xlu0 %v1051_v30 }
 0x273   : > { %v1038_v31 = vpop.xlane.xlu0 %1037 }
 0x274   : > { %v1058_v32 = vsub.f32 %v1902_v15, %v1038_v31  ;;  %v652_v15 = vadd.f32 %v1889_v13, %v1626_v7 }
 0x276   : > { %v1067_v33 = vmul.f32 1.442695, %v1058_v32 }
 0x277   : > { %v1035_v34 = vpop.xlane.xlu0 %1034 }
 0x278   : > { %2132 = vpow2.f32 %v1067_v33  ;;  %v1057_v35 = vsub.f32 %v762_v17, %v1035_v34  ;;  %v2076_v17 = vpack.c.bf16 %v652_v15, %v647_v16 }
 0x27a   : > { %v1065_v36 = vmul.f32 1.442695, %v1057_v35  ;;  %2077 = vmatprep.subr.bf16.mxu0 %v2076_v17 }
 0x27b   : > { %v1044_v37 = vpop.xlane.xlu1 %1043  ;;  %2079 = vmatpush3.bf16.msra.mxu0 %v2076_v17 }
 0x27c   : > { %2134 = vpow2.f32 %v1065_v36  ;;  %v1060_v38 = vsub.f32 %v1909_v19, %v1044_v37  ;;  %v656_v19 = vpop.f32.mrb[13].mxu0 }
 0x27e   : > { %v1071_v39 = vmul.f32 1.442695, %v1060_v38 }
 0x27f   : > { %v1041_v40 = vpop.xlane.xlu1 %1040 }
 0x280   : > { %2136 = vpow2.f32 %v1071_v39  ;;  %v1059_v41 = vsub.f32 %v849_v21, %v1041_v40  ;;  %v657_v21 = vadd.f32 %v1626_v7, %v656_v19 }
 0x282   : > { %v2546_v42 = vpop.eup %2132  ;;  %v1069_v43 = vmul.f32 1.442695, %v1059_v41  ;;  %v2080_v22 = vpack.c.bf16 %v662_v20, %v657_v21 }
 0x283   : > { %v1050_v44 = vpop.xlane.xlu1 %1049  ;;  %v1084_v45 = vsel %vm1032_vm2, %v2546_v42, 0.0 }
 0x284   : > { %2138 = vpow2.f32 %v1069_v43  ;;  %v1062_v46 = vsub.f32 %v1916_v23, %v1050_v44  ;;  %v1047_v47 = vpop.xlane.xlu0 %1046  ;;  %1085 = vadd.xlane.f32.xlu1 %v1084_v45  ;;  %2081 = vmatprep.subr.bf16.mxu1 %v2080_v22  ;;  %v1895_v23 = vpop.f32.mrb[14].mxu0 }
 0x285   : > { %v1061_v48 = vsub.f32 %v936_v24, %v1047_v47  ;;  %v666_v24 = vpop.f32.mrb[15].mxu0  ;;  %v672_v25 = vadd.f32 %v1895_v23, %v1626_v7 }
 0x286   : > { %v2550_v49 = vpop.eup %2134  ;;  %v1075_v50 = vmul.f32 1.442695, %v1062_v46  ;;  %v667_v26 = vadd.f32 %v1626_v7, %v666_v24 }
 0x287   : > { %v1073_v51 = vmul.f32 1.442695, %v1061_v48  ;;  %v1081_v52 = vsel %vm1032_vm2, %v2550_v49, 0.0 }
 0x288   : > { %2140 = vpow2.f32 %v1075_v50  ;;  %1082 = vadd.xlane.f32.xlu0 %v1081_v52 }
 0x289   : > { %2142 = vpow2.f32 %v1073_v51 }
 0x28a   : > { %v2554_v53 = vpop.eup %2136 }
 0x28b   : > { %v1056_v54 = vpop.xlane.xlu1 %1055  ;;  %v1090_v55 = vsel %vm1032_vm2, %v2554_v53, 0.0 }
 0x28c   : > { %v1064_v56 = vsub.f32 %v1923_v27, %v1056_v54  ;;  %1091 = vadd.xlane.f32.xlu1 %v1090_v55  ;;  %v1053_v57 = vpop.xlane.xlu0 %1052  ;;  %v2084_v27 = vpack.c.bf16 %v672_v25, %v667_v26 }
 0x28d   : > { %v1063_v58 = vsub.f32 %v1023_v28, %v1053_v57 }
 0x28e   : > { %v2558_v59 = vpop.eup %2138  ;;  %v1079_v60 = vmul.f32 1.442695, %v1064_v56  ;;  %2085 = vmatprep.subr.bf16.mxu0 %v2084_v27 }
 0x28f   : > { %v1077_v61 = vmul.f32 1.442695, %v1063_v58  ;;  %v1087_v62 = vsel %vm1032_vm2, %v2558_v59, 0.0 }
 0x290   : > { %2144 = vpow2.f32 %v1079_v60  ;;  %1088 = vadd.xlane.f32.xlu0 %v1087_v62 }
 0x291   : > { %2146 = vpow2.f32 %v1077_v61 }
 0x292   : > { %v2562_v63 = vpop.eup %2140 }
 0x293   : > { %v2564_v0 = vpop.eup %2142  ;;  %v1096_v1 = vsel %vm1032_vm2, %v2562_v63, 0.0 }
 0x294   : > { %1097 = vadd.xlane.f32.xlu1 %v1096_v1  ;;  %v1093_v2 = vsel %vm1032_vm2, %v2564_v0, 0.0 }
 0x295   : > { %1094 = vadd.xlane.f32.xlu0 %v1093_v2 }
 0x29a   : > { %v2570_v3 = vpop.eup %2144 }
 0x29b   : > { %v2572_v5 = vpop.eup %2146  ;;  %v1102_v6 = vsel %vm1032_vm2, %v2570_v3, 0.0 }
 0x29c   : > { %1103 = vadd.xlane.f32.xlu1 %v1102_v6  ;;  %v1099_v9 = vsel %vm1032_vm2, %v2572_v5, 0.0 }
 0x29d   : > { %1100 = vadd.xlane.f32.xlu0 %v1099_v9 }
 0x311   : > { %v1086_v28 = vpop.xlane.xlu1 %1085 }
 0x312   : > { %2148 = vrcp.f32 %v1086_v28 }
 0x315   : > { %v1083_v29 = vpop.xlane.xlu0 %1082 }
 0x316   : > { %2150 = vrcp.f32 %v1083_v29 }
 0x319   : > { %v1092_v30 = vpop.xlane.xlu1 %1091 }
 0x31a   : > { %2152 = vrcp.f32 %v1092_v30 }
 0x31c   : > { %v2149_v32 = vpop.eup %2148 }
 0x31d   : > { %v1089_v31 = vpop.xlane.xlu0 %1088  ;;  %v1114_v36 = vmul.f32 %v2149_v32, %v2546_v42 }
 0x31e   : > { %2154 = vrcp.f32 %v1089_v31 }
 0x320   : > { %v2151_v33 = vpop.eup %2150 }
 0x321   : > { %v1098_v34 = vpop.xlane.xlu1 %1097  ;;  %v1113_v35 = vmul.f32 %v2151_v33, %v2550_v49 }
 0x322   : > { %2156 = vrcp.f32 %v1098_v34  ;;  %v1095_v37 = vpop.xlane.xlu0 %1094 }
 0x323   : > { %2158 = vrcp.f32 %v1095_v37  ;;  %1928 = vmatprep.mubr.msk.f32.mxu1 %vm1032_vm2, %v1113_v35 }
 0x324   : > { %1929 = vmatmul.mubr.msk.f32.vlgmr.msra.gmra.mrb[16].mxu1 %vm1032_vm2, %v1114_v36  ;;  %v2153_v38 = vpop.eup %2152 }
 0x325   : > { %2083 = vmatpush3.bf16.msra.mxu1 %v2080_v22  ;;  %v1116_v43 = vmul.f32 %v2153_v38, %v2554_v53 }
 0x328   : > { %v2155_v39 = vpop.eup %2154 }
 0x329   : > { %v1104_v40 = vpop.xlane.xlu1 %1103  ;;  %v1115_v41 = vmul.f32 %v2155_v39, %v2558_v59 }
 0x32a   : > { %2160 = vrcp.f32 %v1104_v40  ;;  %v1101_v44 = vpop.xlane.xlu0 %1100 }
 0x32b   : > { %2162 = vrcp.f32 %v1101_v44  ;;  %1935 = vmatprep.mubr.msk.f32.mxu0 %vm1032_vm2, %v1115_v41 }
 0x32c   : > { %v2157_v42 = vpop.eup %2156  ;;  %1936 = vmatmul.mubr.msk.f32.vlgmr.msra.gmra.mrb[16].mxu0 %vm1032_vm2, %v1116_v43 }
 0x32d   : > { %v2159_v45 = vpop.eup %2158  ;;  %2087 = vmatpush3.bf16.msra.mxu0 %v2084_v27  ;;  %v1118_v47 = vmul.f32 %v2157_v42, %v2562_v63 }
 0x32e   : > { %v1117_v46 = vmul.f32 %v2159_v45, %v2564_v0 }
 0x330   : > { %1942 = vmatprep.mubr.msk.f32.mxu1 %vm1032_vm2, %v1117_v46 }
 0x331   : > { %1943 = vmatmul.mubr.msk.f32.vlgmr.msra.gmra.mrb[18].mxu1 %vm1032_vm2, %v1118_v47 }
 0x334   : > { %v2161_v48 = vpop.eup %2160 }
 0x335   : > { %v2163_v49 = vpop.eup %2162  ;;  %v1120_v51 = vmul.f32 %v2161_v48, %v2570_v3 }
 0x336   : > { %v1119_v50 = vmul.f32 %v2163_v49, %v2572_v5 }
 0x338   : > { %1949 = vmatprep.mubr.msk.f32.mxu0 %vm1032_vm2, %v1119_v50 }
 0x339   : > { %1950 = vmatmul.mubr.msk.f32.vlgmr.msra.gmra.mrb[18].mxu0 %vm1032_vm2, %v1120_v51 }
 0x3f7   : > { %v1930_v52 = vpop.f32.mrb[16].mxu1 }
 0x3f8   : > { %v1193_v53 = vpop.f32.mrb[17].mxu1 }
 0x3ff   : > { %v1937_v54 = vpop.f32.mrb[16].mxu0 }
 0x400   : > { %1449 = vrot.lane.b32.xlu1 %v1937_v54, %s2228_s13  ;;  %v1274_v55 = vpop.f32.mrb[17].mxu0 }
 0x401   : > { %1447 = vrot.lane.b32.xlu0 %v1274_v55, %s2228_s13 }
 0x404   : > { %v1944_v56 = vpop.f32.mrb[18].mxu1 }
 0x405   : > { %1457 = vrot.lane.b32.xlu1 %v1944_v56, %s2229_s15  ;;  %v1355_v57 = vpop.f32.mrb[19].mxu1 }
 0x409   : > { %1455 = vrot.lane.b32.xlu1 %v1355_v57, %s2229_s15 }
 0x40c   : > { %v1951_v58 = vpop.f32.mrb[18].mxu0 }
 0x40d   : > { %1465 = vrot.lane.b32.xlu1 %v1951_v58, %s2230_s16  ;;  %v1436_v59 = vpop.f32.mrb[19].mxu0 }
 0x40e   : > { %1463 = vrot.lane.b32.xlu0 %v1436_v59, %s2230_s16 }
 0x472   : > { %v1450_v60 = vpop.permute.xlu1 %1449 }
 0x473   : > { %v1448_v63 = vpop.permute.xlu0 %1447  ;;  %v1470_v0 = vsel %vm683_vm0, %v1930_v52, %v1450_v60 }
 0x474   : > { %v1469_v1 = vsel %vm683_vm0, %v1193_v53, %v1448_v63 }
 0x477   : > { %v1458_v61 = vpop.permute.xlu1 %1457 }
 0x478   : > { %v1473_v2 = vsel %vm1471_vm3, %v1470_v0, %v1458_v61 }
 0x47b   : > { %v1456_v62 = vpop.permute.xlu1 %1455 }
 0x47c   : > { %v1472_v4 = vsel %vm1471_vm3, %v1469_v1, %v1456_v62 }
 0x47f   : > { %v1466_v3 = vpop.permute.xlu1 %1465 }
 0x480   : > { %v1476_v5 = vsel %vm1474_vm4, %v1473_v2, %v1466_v3  ;;  %v1464_v6 = vpop.permute.xlu0 %1463 }
 0x481   : > { %1478 = vst [vmem:[%s247_s25 + $0x8] sm:$0xff] %v1476_v5  ;;  %v1475_v7 = vsel %vm1474_vm4, %v1472_v4, %v1464_v6 }
 0x482   : > { %1477 = vst [vmem:[%s247_s25] sm:$0xff] %v1475_v7 }
 0x483   : > { %2177 = shalt.err (!%p2174_p3)
}
 0x484   : > { %s2178_s11 = scalar_lea.hbm %s2606_s12, 256  ;;  %s2182_s16 = scalar_lea.hbm %s2654_s5, 512 }
 0x485   : > { %p2179_p4 = scmp.ne.s32.totalorder %s2606_s12, %s2178_s11  ;;  %p2183_p9 = scmp.lt.u32.totalorder %s2606_s12, %s2654_s5 }
 0x486   : > { %p2184_p10 = scmp.lt.u32.totalorder %s2182_s16, %s2178_s11  ;;  %p2186_p12 = scmp.lt.u32.totalorder %s2178_s11, %s2606_s12 }
 0x487   : > { %p2180_p7 = pnand %p2179_p4, %p2302_p5 }
 0x488   : > { %p2185_p11 = por %p2184_p10, %p2183_p9 }
 0x489   : > { %p2181_p8 = pneg %p2180_p7 }
 0x48a   : > { %p2187_p13 = por %p2186_p12, %p2185_p11 }
 0x48c   : > { %p2188_p0 = pnand %p2187_p13, %p2181_p8 }
 0x48e   : > { %2191 = shalt.err (!%p2188_p0)
}
 0x48f   : > { %s2232_s25 = smov 128   ;;  %s2233_s30 = smov 8  }
 0x490   : > { %2088 = dma.vmem_to_hbm [thread:$0]  (%p2302_p5), %s2601_s26, 256, %s2606_s12, %s2608_s22, %s2232_s25, %s2232_s25, %s2233_s30  }
 0x491 PF: > { %p2094_p1 = scmp.ge.s32.totalorder %s2226_s21, 2  ;;  %s1508_s6 = sand.u32 1, %s2214_s18  }
 0x492   : > { %s1509_s9 = scalar_lea.sflag [#allocation3], %s1508_s6 }
 0x493   : > { %p2091_p2 = pnand %p2094_p1, %p2306_p6 }
 0x495   : > { %2209 = dma.done.wait (!%p2091_p2), %s1509_s9, 256  }
 0x496   : > { %2211 = vsyncadd (!%p2091_p2), %s1509_s9, 4294967040  ;;  %p15_p3 = scmp.ge.s32.totalorder %s2289_s24, 4   ;;  %s2659_s18 = smov %s2218_s19 }
 0x497   : > { %s2660_s19 = smov %s2222_s20  ;;  %s2661_s20 = smov %s2300_s27 }
 0x498   : > { %s2662_s21 = smov %s2289_s24  ;;  %17 = sbr.rel (!%p15_p3) target bundleno = 3 (0x3), region = 85 }
 0x49f   :  { %1514 = vsyncpa [#allocation3], 1 }
 0x4a0   :  { %1516 = vsyncpa [#allocation3 + $0x1], 1 }

</bundles_post_ra>
